<compile_context>
chip_gen: v7x
topology: tpu7x:2x2x1
jax: 0.10.0
libtpu: 0.0.40
codegen_flags: <defaults>
</compile_context>

<pallas_src>
import functools
import math

import jax
import jax.numpy as jnp
from jax import lax
from jax.experimental import pallas as pl


def _round_up(n, m):
    return ((n + m - 1) // m) * m


def _rnn_kernel(x_ref, wih_ref, whh_ref, b_ref, wfc_ref, bfc_ref, out_ref, *,
                o_reduce):
    # x_ref   : (B, T, I)   native batch-first input (full-array block)
    # wih_ref : (I, Hp)     f32, input->hidden weights, transposed, lane-padded
    # whh_ref : (Hp, Hp)    bf16, hidden->hidden weights, transposed, zero-padded
    # b_ref   : (1, Hp)     f32, b_ih + b_hh, zero-padded
    # wfc_ref : (1, Hp) f32 if o_reduce (O==1)  else  (Hp, Op) bf16
    # bfc_ref : (1, 128) f32 if o_reduce        else  (1, Op)  f32
    # out_ref : (B, 128) f32 if o_reduce        else  (B, Op)  f32
    B, T, I = x_ref.shape

    whh = whh_ref[...]            # (Hp, Hp) bf16, resident across the loop
    b = b_ref[...]                # (1, Hp)  f32
    x = x_ref[...]                # (B, T, I) f32

    if I == 1:
        wih_row = wih_ref[...]    # (1, Hp)

        def xproj(t):             # lazy: one VPU broadcast FMA per step
            return x[:, t, :] * wih_row + b            # (B,1)*(1,Hp) -> (B,Hp)
    else:
        xall = lax.dot_general(x, wih_ref[...], (((2,), (0,)), ((), ())),
                               preferred_element_type=jnp.float32) + b

        def xproj(t):
            return xall[:, t, :]                        # (B, Hp)

    # ---- fully unrolled recurrence: h0 = 0 => step 0 skips h @ W_hh --------
    h = jnp.tanh(xproj(0))                              # (B, Hp) f32
    for t in range(1, T):
        z = xproj(t) + jnp.dot(h.astype(jnp.bfloat16), whh,
                               preferred_element_type=jnp.float32)
        h = jnp.tanh(z)                                 # f32 tanh (EUP)

    # ---- final linear layer -------------------------------------------------
    if o_reduce:
        # O == 1: VPU multiply + cross-lane reduce, lane-dense (B, 128) store.
        w_row = wfc_ref[...]                            # (1, Hp) f32
        red = jnp.sum(h * w_row, axis=-1, keepdims=True)            # (B, 1)
        out_ref[...] = (red + bfc_ref[...]).astype(out_ref.dtype)   # (B, 128)
    else:
        out = jnp.dot(h.astype(jnp.bfloat16), wfc_ref[...],
                      preferred_element_type=jnp.float32) + bfc_ref[...]
        out_ref[...] = out.astype(out_ref.dtype)


def prepare_params(params):
    """One-time (init-time) weight prep: transpose, fuse biases, zero-pad to
    vreg/MXU-friendly shapes, cast recurrent weights to bf16."""
    w_ih, w_hh, b_ih, b_hh, w_fc, b_fc = (
        params["w_ih"], params["w_hh"], params["b_ih"],
        params["b_hh"], params["w_fc"], params["b_fc"],
    )
    H, I = w_ih.shape
    O = w_fc.shape[0]
    Hp = _round_up(H, 128)

    wih_p = jnp.zeros((I, Hp), jnp.float32).at[:, :H].set(w_ih.T.astype(jnp.float32))
    whh_p = (jnp.zeros((Hp, Hp), jnp.float32)
             .at[:H, :H].set(w_hh.T.astype(jnp.float32))
             .astype(jnp.bfloat16))                       # bf16 MXU operand
    b_p = jnp.zeros((1, Hp), jnp.float32).at[0, :H].set((b_ih + b_hh).astype(jnp.float32))

    if O == 1:
        # FC as VPU mul + lane reduce: single padded weight row + broadcast bias.
        wfc_p = jnp.zeros((1, Hp), jnp.float32).at[0, :H].set(w_fc[0].astype(jnp.float32))
        bfc_p = jnp.zeros((1, 128), jnp.float32) + b_fc.astype(jnp.float32)[0]
    else:
        Op = _round_up(O, 128)
        wfc_p = (jnp.zeros((Hp, Op), jnp.float32)
                 .at[:H, :O].set(w_fc.T.astype(jnp.float32))
                 .astype(jnp.bfloat16))
        bfc_p = jnp.zeros((1, Op), jnp.float32).at[0, :O].set(b_fc.astype(jnp.float32))

    return {"wih": wih_p, "whh": whh_p, "b": b_p, "wfc": wfc_p, "bfc": bfc_p,
            "output_size": O}


def rnn_predictor_forward(x, prepared):
    """x: (B, T, I) float32 batch-first (like PyTorch).  Returns (B, output_size)."""
    B, T, I = x.shape
    O = prepared["output_size"]
    o_reduce = (O == 1)
    out_width = 128 if o_reduce else prepared["wfc"].shape[1]

    full = lambda shape: pl.BlockSpec(shape, lambda: (0,) * len(shape))
    kernel = functools.partial(_rnn_kernel, o_reduce=o_reduce)

    out_p = pl.pallas_call(
        kernel,
        out_shape=jax.ShapeDtypeStruct((B, out_width), jnp.float32),
        grid=(),  # everything resident in VMEM, single invocation
        in_specs=[
            full((B, T, I)),
            full(prepared["wih"].shape),
            full(prepared["whh"].shape),
            full(prepared["b"].shape),
            full(prepared["wfc"].shape),
            full(prepared["bfc"].shape),
        ],
        out_specs=full((B, out_width)),
    )(x, prepared["wih"], prepared["whh"], prepared["b"],
      prepared["wfc"], prepared["bfc"])

    return out_p[:, :O]


def init_params(key, input_size=1, hidden_size=50, output_size=1):
    """Deterministic init matching PyTorch nn.RNN / nn.Linear defaults
    (uniform in [-1/sqrt(fan), 1/sqrt(fan)])."""
    k = jax.random.split(key, 6)
    s = 1.0 / math.sqrt(hidden_size)
    u = lambda kk, shape: jax.random.uniform(kk, shape, jnp.float32, minval=-s, maxval=s)
    return {
        "w_ih": u(k[0], (hidden_size, input_size)),    # weight_ih_l0
        "w_hh": u(k[1], (hidden_size, hidden_size)),   # weight_hh_l0
        "b_ih": u(k[2], (hidden_size,)),               # bias_ih_l0
        "b_hh": u(k[3], (hidden_size,)),               # bias_hh_l0
        "w_fc": u(k[4], (output_size, hidden_size)),   # fc.weight
        "b_fc": u(k[5], (output_size,)),               # fc.bias
    }


def _reference_forward(x, params):
    """Pure-JAX f32 reference of the PyTorch forward pass."""
    w_ih, w_hh = params["w_ih"], params["w_hh"]
    b = params["b_ih"] + params["b_hh"]
    B, T, _ = x.shape
    H = w_hh.shape[0]
    h = jnp.zeros((B, H), jnp.float32)
    for t in range(T):
        h = jnp.tanh(x[:, t, :] @ w_ih.T + h @ w_hh.T + b)
    return h @ params["w_fc"].T + params["b_fc"]


if __name__ == "__main__":
    key = jax.random.PRNGKey(0)
    k_param, k_x = jax.random.split(key)

    B, T, I = 2, 8, 1            # batch, seq, input_size (module default I=1)
    H, O = 50, 1                 # module defaults: hidden_size=50, output_size=1

    params = init_params(k_param, input_size=I, hidden_size=H, output_size=O)
    prepared = prepare_params(params)        # one-time init-time weight prep
    x = jax.random.normal(k_x, (B, T, I), dtype=jnp.float32)

    out = rnn_predictor_forward(x, prepared)
    out = jax.block_until_ready(out)

    ref = _reference_forward(x, params)
    assert out.shape == (B, O), out.shape
    # bf16 MXU operands in the recurrence => looser parity tolerance vs f32 ref.
    assert jnp.allclose(out, ref, atol=1e-2, rtol=1e-2), (out, ref)

    print("KERNEL_OK")
</pallas_src>

<mosaic_0001>
module attributes {stable_mosaic.version = 11 : i64} {
  func.func @_rnn_kernel(%arg0: memref<2x8x1xf32, #tpu.memory_space<vmem>>, %arg1: memref<1x128xf32, #tpu.memory_space<vmem>>, %arg2: memref<128x128xbf16, #tpu.memory_space<vmem>>, %arg3: memref<1x128xf32, #tpu.memory_space<vmem>>, %arg4: memref<1x128xf32, #tpu.memory_space<vmem>>, %arg5: memref<1x128xf32, #tpu.memory_space<vmem>>, %arg6: memref<2x128xf32, #tpu.memory_space<vmem>>) attributes {dimension_semantics = [], scalar_prefetch = 0 : i64, scratch_operands = 0 : i64, tpu.core_type = #tpu.core_type<tc>} {
    %c0 = arith.constant 0 : index
    %c0_0 = arith.constant 0 : index
    %0 = vector.load %arg2[%c0, %c0_0] : memref<128x128xbf16, #tpu.memory_space<vmem>>, vector<128x128xbf16>
    %c0_1 = arith.constant 0 : index
    %c0_2 = arith.constant 0 : index
    %1 = vector.load %arg3[%c0_1, %c0_2] : memref<1x128xf32, #tpu.memory_space<vmem>>, vector<1x128xf32>
    %c0_3 = arith.constant 0 : index
    %c0_4 = arith.constant 0 : index
    %c0_5 = arith.constant 0 : index
    %2 = vector.load %arg0[%c0_3, %c0_4, %c0_5] : memref<2x8x1xf32, #tpu.memory_space<vmem>>, vector<2x8x1xf32>
    %c0_6 = arith.constant 0 : index
    %c0_7 = arith.constant 0 : index
    %3 = vector.load %arg1[%c0_6, %c0_7] : memref<1x128xf32, #tpu.memory_space<vmem>>, vector<1x128xf32>
    %4 = vector.extract_strided_slice %2 {offsets = [0, 0, 0], sizes = [2, 1, 1], strides = [1, 1, 1]} : vector<2x8x1xf32> to vector<2x1x1xf32>
    %5 = vector.shape_cast %4 : vector<2x1x1xf32> to vector<2x1xf32>
    %6 = vector.broadcast %5 : vector<2x1xf32> to vector<2x128xf32>
    %7 = vector.broadcast %3 : vector<1x128xf32> to vector<2x128xf32>
    %8 = arith.mulf %6, %7 : vector<2x128xf32>
    %9 = vector.broadcast %1 : vector<1x128xf32> to vector<2x128xf32>
    %10 = arith.addf %8, %9 : vector<2x128xf32>
    %11 = math.tanh %10 : vector<2x128xf32>
    %12 = vector.extract_strided_slice %2 {offsets = [0, 1, 0], sizes = [2, 1, 1], strides = [1, 1, 1]} : vector<2x8x1xf32> to vector<2x1x1xf32>
    %13 = vector.shape_cast %12 : vector<2x1x1xf32> to vector<2x1xf32>
    %14 = vector.broadcast %13 : vector<2x1xf32> to vector<2x128xf32>
    %15 = vector.broadcast %3 : vector<1x128xf32> to vector<2x128xf32>
    %16 = arith.mulf %14, %15 : vector<2x128xf32>
    %17 = vector.broadcast %1 : vector<1x128xf32> to vector<2x128xf32>
    %18 = arith.addf %16, %17 : vector<2x128xf32>
    %19 = arith.truncf %11 : vector<2x128xf32> to vector<2x128xbf16>
    %cst = arith.constant dense<0.000000e+00> : vector<2x128xf32>
    %20 = tpu.matmul %19, %0, %cst {dimension_numbers = #tpu.dot_dimension_numbers<[1], [0], [0], [1], [0, 0, 1, 1], [], []>} : vector<2x128xbf16>, vector<128x128xbf16>, vector<2x128xf32> -> vector<2x128xf32>
    %21 = arith.addf %18, %20 : vector<2x128xf32>
    %22 = math.tanh %21 : vector<2x128xf32>
    %23 = vector.extract_strided_slice %2 {offsets = [0, 2, 0], sizes = [2, 1, 1], strides = [1, 1, 1]} : vector<2x8x1xf32> to vector<2x1x1xf32>
    %24 = vector.shape_cast %23 : vector<2x1x1xf32> to vector<2x1xf32>
    %25 = vector.broadcast %24 : vector<2x1xf32> to vector<2x128xf32>
    %26 = vector.broadcast %3 : vector<1x128xf32> to vector<2x128xf32>
    %27 = arith.mulf %25, %26 : vector<2x128xf32>
    %28 = vector.broadcast %1 : vector<1x128xf32> to vector<2x128xf32>
    %29 = arith.addf %27, %28 : vector<2x128xf32>
    %30 = arith.truncf %22 : vector<2x128xf32> to vector<2x128xbf16>
    %cst_8 = arith.constant dense<0.000000e+00> : vector<2x128xf32>
    %31 = tpu.matmul %30, %0, %cst_8 {dimension_numbers = #tpu.dot_dimension_numbers<[1], [0], [0], [1], [0, 0, 1, 1], [], []>} : vector<2x128xbf16>, vector<128x128xbf16>, vector<2x128xf32> -> vector<2x128xf32>
    %32 = arith.addf %29, %31 : vector<2x128xf32>
    %33 = math.tanh %32 : vector<2x128xf32>
    %34 = vector.extract_strided_slice %2 {offsets = [0, 3, 0], sizes = [2, 1, 1], strides = [1, 1, 1]} : vector<2x8x1xf32> to vector<2x1x1xf32>
    %35 = vector.shape_cast %34 : vector<2x1x1xf32> to vector<2x1xf32>
    %36 = vector.broadcast %35 : vector<2x1xf32> to vector<2x128xf32>
    %37 = vector.broadcast %3 : vector<1x128xf32> to vector<2x128xf32>
    %38 = arith.mulf %36, %37 : vector<2x128xf32>
    %39 = vector.broadcast %1 : vector<1x128xf32> to vector<2x128xf32>
    %40 = arith.addf %38, %39 : vector<2x128xf32>
    %41 = arith.truncf %33 : vector<2x128xf32> to vector<2x128xbf16>
    %cst_9 = arith.constant dense<0.000000e+00> : vector<2x128xf32>
    %42 = tpu.matmul %41, %0, %cst_9 {dimension_numbers = #tpu.dot_dimension_numbers<[1], [0], [0], [1], [0, 0, 1, 1], [], []>} : vector<2x128xbf16>, vector<128x128xbf16>, vector<2x128xf32> -> vector<2x128xf32>
    %43 = arith.addf %40, %42 : vector<2x128xf32>
    %44 = math.tanh %43 : vector<2x128xf32>
    %45 = vector.extract_strided_slice %2 {offsets = [0, 4, 0], sizes = [2, 1, 1], strides = [1, 1, 1]} : vector<2x8x1xf32> to vector<2x1x1xf32>
    %46 = vector.shape_cast %45 : vector<2x1x1xf32> to vector<2x1xf32>
    %47 = vector.broadcast %46 : vector<2x1xf32> to vector<2x128xf32>
    %48 = vector.broadcast %3 : vector<1x128xf32> to vector<2x128xf32>
    %49 = arith.mulf %47, %48 : vector<2x128xf32>
    %50 = vector.broadcast %1 : vector<1x128xf32> to vector<2x128xf32>
    %51 = arith.addf %49, %50 : vector<2x128xf32>
    %52 = arith.truncf %44 : vector<2x128xf32> to vector<2x128xbf16>
    %cst_10 = arith.constant dense<0.000000e+00> : vector<2x128xf32>
    %53 = tpu.matmul %52, %0, %cst_10 {dimension_numbers = #tpu.dot_dimension_numbers<[1], [0], [0], [1], [0, 0, 1, 1], [], []>} : vector<2x128xbf16>, vector<128x128xbf16>, vector<2x128xf32> -> vector<2x128xf32>
    %54 = arith.addf %51, %53 : vector<2x128xf32>
    %55 = math.tanh %54 : vector<2x128xf32>
    %56 = vector.extract_strided_slice %2 {offsets = [0, 5, 0], sizes = [2, 1, 1], strides = [1, 1, 1]} : vector<2x8x1xf32> to vector<2x1x1xf32>
    %57 = vector.shape_cast %56 : vector<2x1x1xf32> to vector<2x1xf32>
    %58 = vector.broadcast %57 : vector<2x1xf32> to vector<2x128xf32>
    %59 = vector.broadcast %3 : vector<1x128xf32> to vector<2x128xf32>
    %60 = arith.mulf %58, %59 : vector<2x128xf32>
    %61 = vector.broadcast %1 : vector<1x128xf32> to vector<2x128xf32>
    %62 = arith.addf %60, %61 : vector<2x128xf32>
    %63 = arith.truncf %55 : vector<2x128xf32> to vector<2x128xbf16>
    %cst_11 = arith.constant dense<0.000000e+00> : vector<2x128xf32>
    %64 = tpu.matmul %63, %0, %cst_11 {dimension_numbers = #tpu.dot_dimension_numbers<[1], [0], [0], [1], [0, 0, 1, 1], [], []>} : vector<2x128xbf16>, vector<128x128xbf16>, vector<2x128xf32> -> vector<2x128xf32>
    %65 = arith.addf %62, %64 : vector<2x128xf32>
    %66 = math.tanh %65 : vector<2x128xf32>
    %67 = vector.extract_strided_slice %2 {offsets = [0, 6, 0], sizes = [2, 1, 1], strides = [1, 1, 1]} : vector<2x8x1xf32> to vector<2x1x1xf32>
    %68 = vector.shape_cast %67 : vector<2x1x1xf32> to vector<2x1xf32>
    %69 = vector.broadcast %68 : vector<2x1xf32> to vector<2x128xf32>
    %70 = vector.broadcast %3 : vector<1x128xf32> to vector<2x128xf32>
    %71 = arith.mulf %69, %70 : vector<2x128xf32>
    %72 = vector.broadcast %1 : vector<1x128xf32> to vector<2x128xf32>
    %73 = arith.addf %71, %72 : vector<2x128xf32>
    %74 = arith.truncf %66 : vector<2x128xf32> to vector<2x128xbf16>
    %cst_12 = arith.constant dense<0.000000e+00> : vector<2x128xf32>
    %75 = tpu.matmul %74, %0, %cst_12 {dimension_numbers = #tpu.dot_dimension_numbers<[1], [0], [0], [1], [0, 0, 1, 1], [], []>} : vector<2x128xbf16>, vector<128x128xbf16>, vector<2x128xf32> -> vector<2x128xf32>
    %76 = arith.addf %73, %75 : vector<2x128xf32>
    %77 = math.tanh %76 : vector<2x128xf32>
    %78 = vector.extract_strided_slice %2 {offsets = [0, 7, 0], sizes = [2, 1, 1], strides = [1, 1, 1]} : vector<2x8x1xf32> to vector<2x1x1xf32>
    %79 = vector.shape_cast %78 : vector<2x1x1xf32> to vector<2x1xf32>
    %80 = vector.broadcast %79 : vector<2x1xf32> to vector<2x128xf32>
    %81 = vector.broadcast %3 : vector<1x128xf32> to vector<2x128xf32>
    %82 = arith.mulf %80, %81 : vector<2x128xf32>
    %83 = vector.broadcast %1 : vector<1x128xf32> to vector<2x128xf32>
    %84 = arith.addf %82, %83 : vector<2x128xf32>
    %85 = arith.truncf %77 : vector<2x128xf32> to vector<2x128xbf16>
    %cst_13 = arith.constant dense<0.000000e+00> : vector<2x128xf32>
    %86 = tpu.matmul %85, %0, %cst_13 {dimension_numbers = #tpu.dot_dimension_numbers<[1], [0], [0], [1], [0, 0, 1, 1], [], []>} : vector<2x128xbf16>, vector<128x128xbf16>, vector<2x128xf32> -> vector<2x128xf32>
    %87 = arith.addf %84, %86 : vector<2x128xf32>
    %88 = math.tanh %87 : vector<2x128xf32>
    %c0_14 = arith.constant 0 : index
    %c0_15 = arith.constant 0 : index
    %89 = vector.load %arg4[%c0_14, %c0_15] : memref<1x128xf32, #tpu.memory_space<vmem>>, vector<1x128xf32>
    %90 = vector.broadcast %89 : vector<1x128xf32> to vector<2x128xf32>
    %91 = arith.mulf %88, %90 : vector<2x128xf32>
    %cst_16 = arith.constant dense<0.000000e+00> : vector<2xf32>
    %92 = vector.multi_reduction <add>, %91, %cst_16 [1] : vector<2x128xf32> to vector<2xf32>
    %93 = vector.shape_cast %92 : vector<2xf32> to vector<2x1xf32>
    %c0_17 = arith.constant 0 : index
    %c0_18 = arith.constant 0 : index
    %94 = vector.load %arg5[%c0_17, %c0_18] : memref<1x128xf32, #tpu.memory_space<vmem>>, vector<1x128xf32>
    %95 = vector.broadcast %93 : vector<2x1xf32> to vector<2x128xf32>
    %96 = vector.broadcast %94 : vector<1x128xf32> to vector<2x128xf32>
    %97 = arith.addf %95, %96 : vector<2x128xf32>
    %c0_19 = arith.constant 0 : index
    %c0_20 = arith.constant 0 : index
    %98 = vector.load %arg6[%c0_19, %c0_20] : memref<2x128xf32, #tpu.memory_space<vmem>>, vector<2x128xf32>
    tpu.vector_store %arg6[%c0_19, %c0_20], %97 {strides = array<i32>} : memref<2x128xf32, #tpu.memory_space<vmem>>, vector<2x128xf32>,
    return
  }
}

</mosaic_0001>

<bundles_post_ra>
// kernel: tpu_custom_call.1
= control target key start
LH: loop header
LB: loop body
LE: loop exit
PB: predicated region body
PF: predicated region fallthrough
CT: control target
= control target key end

     0   :  { %11 = vsyncpa [#allocation3], 0  ;;  %s1165_s0 = inlined_call_operand.vmem [shape: f32[2,8,1], index: 0, kind: input, shape index: {}]   ;;  %s1166_s1 = inlined_call_operand.vmem [shape: f32[1,128], index: 1, kind: input, shape index: {}]   ;;  %s1167_s2 = inlined_call_operand.hbm [shape: bf16[128,128], index: 2, kind: input, shape index: {}]   ;;  %s1168_s3 = inlined_call_operand.vmem [shape: f32[1,128], index: 3, kind: input, shape index: {}]   ;;  %s1169_s4 = inlined_call_operand.vmem [shape: f32[1,128], index: 4, kind: input, shape index: {}]   ;;  %s1170_s5 = inlined_call_operand.vmem [shape: f32[1,128], index: 5, kind: input, shape index: {}]   ;;  %s1171_s6 = inlined_call_operand.hbm [shape: f32[2,128], index: 6, kind: output, shape index: {}]  }
   0x1   :  { %12 = vsyncpa [#allocation4], 0  ;;  %s912_s21 = smov [#allocation2]   ;;  %s864_s25 = scalar_lea.hbm %s1167_s2, 1024 }
   0x2   :  { %s22_s22 = sshll.u32 %s912_s21, 4  ;;  %p865_p0 = scmp.ne.s32.totalorder %s1167_s2, %s864_s25  ;;  %s23_s22 = int_to_ptr.vmem [resolvable:$true] %s22_s22 }
   0x3   :  { %p868_p1 = scmp.lt.u32.totalorder %s864_s25, %s1167_s2 }
   0x5   :  { %p870_p2 = pnand %p868_p1, %p865_p0 }
   0x7   :  { %873 = shalt.err (!%p870_p2)
}
   0x8   :  { %s874_s30 = scalar_lea.vmem %s23_s22, 1024  ;;  %p879_p4 = scmp.lt.s32.totalorder %s23_s22, %s23_s22 }
   0x9   :  { %p875_p3 = scmp.ne.s32.totalorder %s23_s22, %s874_s30  ;;  %p880_p5 = scmp.lt.s32.totalorder %s874_s30, %s874_s30 }
   0xb   :  { %p881_p6 = por %p880_p5, %p879_p4 }
   0xd   :  { %p882_p7 = pnand %p881_p6, %p875_p3 }
   0xf   :  { %885 = shalt.err (!%p882_p7)
}
  0x10   :  { %s913_s7 = smov 64   ;;  %s914_s8 = smov 4  }
  0x11   :  { %28 = dma.hbm_to_vmem [thread:$0]  %s1167_s2, 1024, %s23_s22, [#allocation3], %s913_s7, %s913_s7, %s914_s8  }
  0x12   :  { %908 = dma.done.wait [#allocation3], 1024  }
  0x13   :  { %909 = vsyncadd [#allocation3], 4294966272  ;;  %v915_v0 = vmov 0   ;;  %v916_v1 = vmov 0.0   ;;  %v57_v2 = vld [vmem:[%s1165_s0 + $0x8] sm:$0xff]  ;;  %v971_v3 = vld [vmem:[#allocation2] sm:$0xff]  }
  0x14   :  { %823 = vset.pattern.permute.xlu0 %v915_v0  ;;  %676 = vmatprep.subr.bf16.mxu0 %v916_v1  ;;  %v56_v4 = vld [vmem:[%s1165_s0] sm:$0xff]  ;;  %v977_v5 = vld [vmem:[#allocation2 + $0x8] sm:$0xff]   ;;  %v983_v6 = vld [vmem:[#allocation2 + $0x10] sm:$0xff]   ;;  %vm917_vm0 = vmmov 0   ;;  %vm94_vm1 = vcmask 1041409   ;;  %vm567_vm2 = vcmask 1047559  }
  0x15   :  { %696 = vmatprep.subr.bf16.mxu1 %v916_v1  ;;  %66 = vperm.xlu0 %823, %v57_v2   ;;  %v993_v7 = vld [vmem:[#allocation2 + $0x18] sm:$0xff]   ;;  %v999_v8 = vld [vmem:[#allocation2 + $0x20] sm:$0xff]   ;;  %v1005_v9 = vld [vmem:[#allocation2 + $0x28] sm:$0xff]   ;;  %vm571_vm3 = vcmask 1040384   ;;  %s918_s19 = smov [#allocation5]  }
  0x16   :  { %677 = vmatpush3.bf16.msra.mxu0 %v971_v3  ;;  %697 = vmatpush3.bf16.msra.mxu1 %v971_v3  ;;  %v1011_v10 = vld [vmem:[#allocation2 + $0x30] sm:$0xff]   ;;  %v1017_v11 = vld [vmem:[#allocation2 + $0x38] sm:$0xff]   ;;  %v601_v12 = vld [vmem:[%s1166_s1] ss:$0 sm:$0xff]  ;;  %s592_s20 = sshll.u32 %s918_s19, 4  ;;  %s593_s20 = int_to_ptr.vmem [resolvable:$true] %s592_s20 }
  0x17   :  { %678 = vmatprep.subr.bf16.mxu0 %v916_v1  ;;  %698 = vmatprep.subr.bf16.mxu1 %v916_v1  ;;  %v602_v14 = vld [vmem:[%s1168_s3] ss:$0 sm:$0xff]  ;;  %p891_p9 = scmp.lt.s32.totalorder %s593_s20, %s593_s20 }
  0x18   :  { %692 = vmatprep.mubr.msk.bf16.mxu0 %vm917_vm0, %v916_v1  ;;  %712 = vmatprep.mubr.msk.bf16.mxu1 %vm917_vm0, %v916_v1 }
  0x19   :  { %61 = vperm.xlu0 %823, %v56_v4  }
  0x1a   :  { %679 = vmatpush3.bf16.msra.mxu0 %v977_v5  ;;  %699 = vmatpush3.bf16.msra.mxu1 %v977_v5 }
  0x1b   :  { %680 = vmatprep.subr.bf16.mxu0 %v916_v1  ;;  %700 = vmatprep.subr.bf16.mxu1 %v916_v1 }
  0x1e   :  { %681 = vmatpush3.bf16.msra.mxu0 %v983_v6  ;;  %701 = vmatpush3.bf16.msra.mxu1 %v983_v6 }
  0x1f   :  { %682 = vmatprep.subr.bf16.mxu0 %v916_v1  ;;  %702 = vmatprep.subr.bf16.mxu1 %v916_v1 }
  0x22   :  { %683 = vmatpush3.bf16.msra.mxu0 %v993_v7  ;;  %703 = vmatpush3.bf16.msra.mxu1 %v993_v7 }
  0x23   :  { %684 = vmatprep.subr.bf16.mxu0 %v916_v1  ;;  %704 = vmatprep.subr.bf16.mxu1 %v916_v1 }
  0x26   :  { %685 = vmatpush3.bf16.msra.mxu0 %v999_v8  ;;  %705 = vmatpush3.bf16.msra.mxu1 %v999_v8 }
  0x27   :  { %686 = vmatprep.subr.bf16.mxu0 %v916_v1  ;;  %706 = vmatprep.subr.bf16.mxu1 %v916_v1 }
  0x2a   :  { %687 = vmatpush3.bf16.msra.mxu0 %v1005_v9  ;;  %707 = vmatpush3.bf16.msra.mxu1 %v1005_v9 }
  0x2b   :  { %688 = vmatprep.subr.bf16.mxu0 %v916_v1  ;;  %708 = vmatprep.subr.bf16.mxu1 %v916_v1 }
  0x2e   :  { %689 = vmatpush3.bf16.msra.mxu0 %v1011_v10  ;;  %709 = vmatpush3.bf16.msra.mxu1 %v1011_v10 }
  0x2f   :  { %690 = vmatprep.subr.bf16.mxu0 %v916_v1  ;;  %710 = vmatprep.subr.bf16.mxu1 %v916_v1 }
  0x32   :  { %691 = vmatpush3.bf16.msra.mxu0 %v1017_v11  ;;  %711 = vmatpush3.bf16.msra.mxu1 %v1017_v11 }
  0x33   :  { %716 = vmatprep.subr.bf16.mxu0 %v916_v1  ;;  %736 = vmatprep.subr.bf16.mxu1 %v916_v1 }
  0x94   :  { %v67_v13 = vpop.permute.xlu0 %66 }
  0x95   :  { %v76_v15 = vmul.f32 %v601_v12, %v67_v13 }
  0x97   :  { %v1032_v16 = vadd.f32 %v602_v14, %v76_v15 }
  0x98   :  { %v62_v17 = vpop.permute.xlu0 %61 }
  0x99   :  { %v75_v18 = vmul.f32 %v601_v12, %v62_v17  ;;  %832 = vtanh.f32 %v1032_v16 }
  0x9b   :  { %v1035_v19 = vadd.f32 %v602_v14, %v75_v18 }
  0x9d   :  { %834 = vtanh.f32 %v1035_v19 }
  0xa3   :  { %v833_v20 = vpop.eup %832 }
  0xa4   :  { %v88_v21 = vpack.c.bf16 %v833_v20, %v833_v20 }
  0xa6   :  { %v92_v22 = vunpack.c.l.b16 %v88_v21 }
  0xa7   :  { %v835_v23 = vpop.eup %834 }
  0xa8   :  { %v87_v24 = vpack.c.bf16 %v835_v23, %v835_v23  ;;  %v93_v26 = vrot.slane %v92_v22, 7 }
  0xaa   :  { %v91_v25 = vunpack.c.l.b16 %v87_v24 }
  0xac   :  { %v95_v27 = vsel %vm94_vm1, %v93_v26, %v91_v25 }
  0xad   :  { %v96_v28 = vpack.c.b16 %v95_v27, %v95_v27 }
  0xaf   :  { %693 = vmatmul.mubr.bf16.vlgmr.msra.gmra.mrb[0].mxu0 %v96_v28 }
  0xb0   :  { %717 = vmatpush3.bf16.msra.mxu0 %v971_v3  ;;  %732 = vmatprep.mubr.msk.bf16.mxu0 %vm917_vm0, %v916_v1 }
  0xb1   :  { %718 = vmatprep.subr.bf16.mxu0 %v916_v1 }
  0xb4   :  { %719 = vmatpush3.bf16.msra.mxu0 %v977_v5 }
  0xb5   :  { %720 = vmatprep.subr.bf16.mxu0 %v916_v1 }
  0xb8   :  { %721 = vmatpush3.bf16.msra.mxu0 %v983_v6 }
  0xb9   :  { %722 = vmatprep.subr.bf16.mxu0 %v916_v1 }
  0xbc   :  { %723 = vmatpush3.bf16.msra.mxu0 %v993_v7 }
  0xbd   :  { %724 = vmatprep.subr.bf16.mxu0 %v916_v1 }
  0xc0   :  { %725 = vmatpush3.bf16.msra.mxu0 %v999_v8 }
  0xc1   :  { %726 = vmatprep.subr.bf16.mxu0 %v916_v1 }
  0xc4   :  { %727 = vmatpush3.bf16.msra.mxu0 %v1005_v9 }
  0xc5   :  { %728 = vmatprep.subr.bf16.mxu0 %v916_v1 }
  0xc8   :  { %729 = vmatpush3.bf16.msra.mxu0 %v1011_v10 }
  0xc9   :  { %730 = vmatprep.subr.bf16.mxu0 %v916_v1 }
  0xcc   :  { %731 = vmatpush3.bf16.msra.mxu0 %v1017_v11 }
  0xcd   :  { %756 = vmatprep.subr.bf16.mxu0 %v916_v1 }
 0x182   :  { %v180_v29 = vpop.f32.mrb[0].mxu0 }
 0x183   :  { %v187_v30 = vrot.slane %v180_v29, 7  ;;  %v191_v31 = vadd.f32 %v180_v29, %v1032_v16  ;;  %v694_v32 = vpop.f32.mrb[1].mxu0 }
 0x184   :  { %v183_v33 = vpop.f32.mrb[2].mxu0 }
 0x185   :  { %v190_v34 = vadd.f32 %v187_v30, %v1035_v19  ;;  %836 = vtanh.f32 %v191_v31  ;;  %v695_v35 = vpop.f32.mrb[3].mxu0 }
 0x187   :  { %838 = vtanh.f32 %v190_v34 }
 0x18f   :  { %v837_v36 = vpop.eup %836 }
 0x190   :  { %v195_v39 = vpack.c.bf16 %v837_v36, %v837_v36 }
 0x191   :  { %v839_v37 = vpop.eup %838 }
 0x192   :  { %v194_v38 = vpack.c.bf16 %v839_v37, %v839_v37  ;;  %v199_v41 = vunpack.c.l.b16 %v195_v39 }
 0x194   :  { %v198_v40 = vunpack.c.l.b16 %v194_v38 }
 0x196   :  { %v200_v42 = vrot.slane %v198_v40, 1 }
 0x198   :  { %v201_v43 = vsel %vm94_vm1, %v199_v41, %v200_v42 }
 0x199   :  { %v202_v44 = vpack.c.b16 %v201_v43, %v201_v43 }
 0x19b   :  { %713 = vmatmul.mubr.bf16.vlgmr.msra.gmra.mrb[0].mxu1 %v202_v44 }
 0x19c   :  { %737 = vmatpush3.bf16.msra.mxu1 %v971_v3  ;;  %752 = vmatprep.mubr.msk.bf16.mxu1 %vm917_vm0, %v916_v1 }
 0x19d   :  { %738 = vmatprep.subr.bf16.mxu1 %v916_v1 }
 0x1a0   :  { %739 = vmatpush3.bf16.msra.mxu1 %v977_v5 }
 0x1a1   :  { %740 = vmatprep.subr.bf16.mxu1 %v916_v1 }
 0x1a4   :  { %741 = vmatpush3.bf16.msra.mxu1 %v983_v6 }
 0x1a5   :  { %742 = vmatprep.subr.bf16.mxu1 %v916_v1 }
 0x1a8   :  { %743 = vmatpush3.bf16.msra.mxu1 %v993_v7 }
 0x1a9   :  { %744 = vmatprep.subr.bf16.mxu1 %v916_v1 }
 0x1ac   :  { %745 = vmatpush3.bf16.msra.mxu1 %v999_v8 }
 0x1ad   :  { %746 = vmatprep.subr.bf16.mxu1 %v916_v1 }
 0x1b0   :  { %747 = vmatpush3.bf16.msra.mxu1 %v1005_v9 }
 0x1b1   :  { %748 = vmatprep.subr.bf16.mxu1 %v916_v1 }
 0x1b4   :  { %749 = vmatpush3.bf16.msra.mxu1 %v1011_v10 }
 0x1b5   :  { %750 = vmatprep.subr.bf16.mxu1 %v916_v1 }
 0x1b8   :  { %751 = vmatpush3.bf16.msra.mxu1 %v1017_v11 }
 0x1b9   :  { %776 = vmatprep.subr.bf16.mxu1 %v916_v1 }
 0x26e   :  { %v238_v45 = vpop.f32.mrb[0].mxu1 }
 0x26f   :  { %v245_v46 = vrot.slane %v238_v45, 6  ;;  %v246_v47 = vrot.slane %v238_v45, 7  ;;  %v714_v48 = vpop.f32.mrb[1].mxu1 }
 0x270   :  { %v241_v49 = vpop.f32.mrb[2].mxu1 }
 0x271   :  { %v249_v50 = vadd.f32 %v245_v46, %v1035_v19  ;;  %v250_v51 = vadd.f32 %v246_v47, %v1032_v16  ;;  %v715_v52 = vpop.f32.mrb[3].mxu1 }
 0x273   :  { %840 = vtanh.f32 %v249_v50 }
 0x274   :  { %842 = vtanh.f32 %v250_v51 }
 0x27d   :  { %v841_v53 = vpop.eup %840 }
 0x27e   :  { %v843_v54 = vpop.eup %842  ;;  %v253_v55 = vpack.c.bf16 %v841_v53, %v841_v53 }
 0x27f   :  { %v254_v56 = vpack.c.bf16 %v843_v54, %v843_v54 }
 0x280   :  { %v257_v57 = vunpack.c.l.b16 %v253_v55 }
 0x281   :  { %v258_v58 = vunpack.c.l.b16 %v254_v56 }
 0x282   :  { %v259_v59 = vrot.slane %v257_v57, 2 }
 0x283   :  { %v260_v60 = vrot.slane %v258_v58, 1 }
 0x285   :  { %v261_v61 = vsel %vm94_vm1, %v260_v60, %v259_v59 }
 0x286   :  { %v262_v62 = vpack.c.b16 %v261_v61, %v261_v61 }
 0x288   :  { %733 = vmatmul.mubr.bf16.vlgmr.msra.gmra.mrb[4].mxu0 %v262_v62 }
 0x289   :  { %757 = vmatpush3.bf16.msra.mxu0 %v971_v3  ;;  %772 = vmatprep.mubr.msk.bf16.mxu0 %vm917_vm0, %v916_v1 }
 0x28a   :  { %758 = vmatprep.subr.bf16.mxu0 %v916_v1 }
 0x28d   :  { %759 = vmatpush3.bf16.msra.mxu0 %v977_v5 }
 0x28e   :  { %760 = vmatprep.subr.bf16.mxu0 %v916_v1 }
 0x291   :  { %761 = vmatpush3.bf16.msra.mxu0 %v983_v6 }
 0x292   :  { %762 = vmatprep.subr.bf16.mxu0 %v916_v1 }
 0x295   :  { %763 = vmatpush3.bf16.msra.mxu0 %v993_v7 }
 0x296   :  { %764 = vmatprep.subr.bf16.mxu0 %v916_v1 }
 0x299   :  { %765 = vmatpush3.bf16.msra.mxu0 %v999_v8 }
 0x29a   :  { %766 = vmatprep.subr.bf16.mxu0 %v916_v1 }
 0x29d   :  { %767 = vmatpush3.bf16.msra.mxu0 %v1005_v9 }
 0x29e   :  { %768 = vmatprep.subr.bf16.mxu0 %v916_v1 }
 0x2a1   :  { %769 = vmatpush3.bf16.msra.mxu0 %v1011_v10 }
 0x2a2   :  { %770 = vmatprep.subr.bf16.mxu0 %v916_v1 }
 0x2a5   :  { %771 = vmatpush3.bf16.msra.mxu0 %v1017_v11 }
 0x2a6   :  { %796 = vmatprep.subr.bf16.mxu0 %v916_v1 }
 0x35b   :  { %v298_v63 = vpop.f32.mrb[4].mxu0 }
 0x35c   :  { %v305_v0 = vrot.slane %v298_v63, 5  ;;  %v306_v2 = vrot.slane %v298_v63, 6  ;;  %v734_v4 = vpop.f32.mrb[5].mxu0 }
 0x35d   :  { %v301_v12 = vpop.f32.mrb[6].mxu0 }
 0x35e   :  { %v309_v13 = vadd.f32 %v305_v0, %v1035_v19  ;;  %v310_v14 = vadd.f32 %v306_v2, %v1032_v16  ;;  %v735_v15 = vpop.f32.mrb[7].mxu0 }
 0x360   :  { %844 = vtanh.f32 %v309_v13 }
 0x361   :  { %846 = vtanh.f32 %v310_v14 }
 0x36a   :  { %v845_v17 = vpop.eup %844 }
 0x36b   :  { %v847_v18 = vpop.eup %846  ;;  %v313_v20 = vpack.c.bf16 %v845_v17, %v845_v17 }
 0x36c   :  { %v314_v21 = vpack.c.bf16 %v847_v18, %v847_v18 }
 0x36d   :  { %v317_v22 = vunpack.c.l.b16 %v313_v20 }
 0x36e   :  { %v318_v23 = vunpack.c.l.b16 %v314_v21 }
 0x36f   :  { %v319_v24 = vrot.slane %v317_v22, 3 }
 0x370   :  { %v320_v25 = vrot.slane %v318_v23, 2 }
 0x372   :  { %v321_v26 = vsel %vm94_vm1, %v320_v25, %v319_v24 }
 0x373   :  { %v322_v27 = vpack.c.b16 %v321_v26, %v321_v26 }
 0x375   :  { %753 = vmatmul.mubr.bf16.vlgmr.msra.gmra.mrb[4].mxu1 %v322_v27 }
 0x376   :  { %777 = vmatpush3.bf16.msra.mxu1 %v971_v3  ;;  %792 = vmatprep.mubr.msk.bf16.mxu1 %vm917_vm0, %v916_v1 }
 0x377   :  { %778 = vmatprep.subr.bf16.mxu1 %v916_v1 }
 0x37a   :  { %779 = vmatpush3.bf16.msra.mxu1 %v977_v5 }
 0x37b   :  { %780 = vmatprep.subr.bf16.mxu1 %v916_v1 }
 0x37e   :  { %781 = vmatpush3.bf16.msra.mxu1 %v983_v6 }
 0x37f   :  { %782 = vmatprep.subr.bf16.mxu1 %v916_v1 }
 0x382   :  { %783 = vmatpush3.bf16.msra.mxu1 %v993_v7 }
 0x383   :  { %784 = vmatprep.subr.bf16.mxu1 %v916_v1 }
 0x386   :  { %785 = vmatpush3.bf16.msra.mxu1 %v999_v8 }
 0x387   :  { %786 = vmatprep.subr.bf16.mxu1 %v916_v1 }
 0x38a   :  { %787 = vmatpush3.bf16.msra.mxu1 %v1005_v9 }
 0x38b   :  { %788 = vmatprep.subr.bf16.mxu1 %v916_v1 }
 0x38e   :  { %789 = vmatpush3.bf16.msra.mxu1 %v1011_v10 }
 0x38f   :  { %790 = vmatprep.subr.bf16.mxu1 %v916_v1 }
 0x392   :  { %791 = vmatpush3.bf16.msra.mxu1 %v1017_v11 }
 0x448   :  { %v358_v28 = vpop.f32.mrb[4].mxu1 }
 0x449   :  { %v365_v29 = vrot.slane %v358_v28, 4  ;;  %v366_v30 = vrot.slane %v358_v28, 5  ;;  %v754_v31 = vpop.f32.mrb[5].mxu1  ;;  %v611_v28 = vld [vmem:[%s1169_s4] ss:$0 sm:$0xff]  ;;  %s886_s4 = scalar_lea.vmem %s593_s20, 32 }
 0x44a   :  { %v361_v32 = vpop.f32.mrb[6].mxu1  ;;  %p887_p8 = scmp.ne.s32.totalorder %s593_s20, %s886_s4  ;;  %p892_p10 = scmp.lt.s32.totalorder %s886_s4, %s886_s4 }
 0x44b   :  { %v369_v33 = vadd.f32 %v365_v29, %v1035_v19  ;;  %v370_v34 = vadd.f32 %v366_v30, %v1032_v16  ;;  %v755_v35 = vpop.f32.mrb[7].mxu1 }
 0x44c   :  { %p893_p11 = por %p892_p10, %p891_p9 }
 0x44d   :  { %848 = vtanh.f32 %v369_v33 }
 0x44e   :  { %850 = vtanh.f32 %v370_v34  ;;  %p894_p12 = pnand %p893_p11, %p887_p8 }
 0x457   :  { %v849_v36 = vpop.eup %848 }
 0x458   :  { %v851_v37 = vpop.eup %850  ;;  %v373_v38 = vpack.c.bf16 %v849_v36, %v849_v36 }
 0x459   :  { %v374_v39 = vpack.c.bf16 %v851_v37, %v851_v37 }
 0x45a   :  { %v377_v40 = vunpack.c.l.b16 %v373_v38 }
 0x45b   :  { %v378_v41 = vunpack.c.l.b16 %v374_v39 }
 0x45c   :  { %v379_v42 = vrot.slane %v377_v40, 4 }
 0x45d   :  { %v380_v43 = vrot.slane %v378_v41, 3 }
 0x45f   :  { %v381_v44 = vsel %vm94_vm1, %v380_v43, %v379_v42 }
 0x460   :  { %v382_v45 = vpack.c.b16 %v381_v44, %v381_v44 }
 0x462   :  { %773 = vmatmul.mubr.bf16.vlgmr.msra.gmra.mrb[8].mxu0 %v382_v45 }
 0x463   :  { %797 = vmatpush3.bf16.msra.mxu0 %v971_v3  ;;  %812 = vmatprep.mubr.msk.bf16.mxu0 %vm917_vm0, %v916_v1 }
 0x464   :  { %798 = vmatprep.subr.bf16.mxu0 %v916_v1 }
 0x467   :  { %799 = vmatpush3.bf16.msra.mxu0 %v977_v5 }
 0x468   :  { %800 = vmatprep.subr.bf16.mxu0 %v916_v1 }
 0x46b   :  { %801 = vmatpush3.bf16.msra.mxu0 %v983_v6 }
 0x46c   :  { %802 = vmatprep.subr.bf16.mxu0 %v916_v1 }
 0x46f   :  { %803 = vmatpush3.bf16.msra.mxu0 %v993_v7 }
 0x470   :  { %804 = vmatprep.subr.bf16.mxu0 %v916_v1 }
 0x473   :  { %805 = vmatpush3.bf16.msra.mxu0 %v999_v8 }
 0x474   :  { %806 = vmatprep.subr.bf16.mxu0 %v916_v1 }
 0x477   :  { %807 = vmatpush3.bf16.msra.mxu0 %v1005_v9 }
 0x478   :  { %808 = vmatprep.subr.bf16.mxu0 %v916_v1 }
 0x47b   :  { %809 = vmatpush3.bf16.msra.mxu0 %v1011_v10 }
 0x47c   :  { %810 = vmatprep.subr.bf16.mxu0 %v916_v1 }
 0x47f   :  { %811 = vmatpush3.bf16.msra.mxu0 %v1017_v11 }
 0x535   :  { %v418_v3 = vpop.f32.mrb[8].mxu0 }
 0x536   :  { %v425_v5 = vrot.slane %v418_v3, 3  ;;  %v426_v6 = vrot.slane %v418_v3, 4  ;;  %v774_v7 = vpop.f32.mrb[9].mxu0 }
 0x537   :  { %v421_v46 = vpop.f32.mrb[10].mxu0 }
 0x538   :  { %v429_v47 = vadd.f32 %v425_v5, %v1035_v19  ;;  %v430_v8 = vadd.f32 %v426_v6, %v1032_v16  ;;  %v775_v48 = vpop.f32.mrb[11].mxu0 }
 0x53a   :  { %852 = vtanh.f32 %v429_v47 }
 0x53b   :  { %854 = vtanh.f32 %v430_v8 }
 0x544   :  { %v853_v9 = vpop.eup %852 }
 0x545   :  { %v855_v49 = vpop.eup %854  ;;  %v433_v50 = vpack.c.bf16 %v853_v9, %v853_v9 }
 0x546   :  { %v434_v10 = vpack.c.bf16 %v855_v49, %v855_v49 }
 0x547   :  { %v437_v51 = vunpack.c.l.b16 %v433_v50 }
 0x548   :  { %v438_v1 = vunpack.c.l.b16 %v434_v10 }
 0x549   :  { %v439_v52 = vrot.slane %v437_v51, 5 }
 0x54a   :  { %v440_v11 = vrot.slane %v438_v1, 4 }
 0x54c   :  { %v441_v53 = vsel %vm94_vm1, %v440_v11, %v439_v52 }
 0x54d   :  { %v442_v54 = vpack.c.b16 %v441_v53, %v441_v53 }
 0x54f   :  { %793 = vmatmul.mubr.bf16.vlgmr.msra.gmra.mrb[8].mxu1 %v442_v54 }
 0x622   :  { %v478_v55 = vpop.f32.mrb[8].mxu1 }
 0x623   :  { %v485_v56 = vrot.slane %v478_v55, 2  ;;  %v486_v57 = vrot.slane %v478_v55, 3  ;;  %v794_v58 = vpop.f32.mrb[9].mxu1 }
 0x624   :  { %v481_v59 = vpop.f32.mrb[10].mxu1 }
 0x625   :  { %v489_v60 = vadd.f32 %v485_v56, %v1035_v19  ;;  %v490_v61 = vadd.f32 %v486_v57, %v1032_v16  ;;  %v795_v62 = vpop.f32.mrb[11].mxu1 }
 0x627   :  { %856 = vtanh.f32 %v489_v60 }
 0x628   :  { %858 = vtanh.f32 %v490_v61 }
 0x631   :  { %v857_v63 = vpop.eup %856 }
 0x632   :  { %v859_v0 = vpop.eup %858  ;;  %v493_v2 = vpack.c.bf16 %v857_v63, %v857_v63 }
 0x633   :  { %v494_v4 = vpack.c.bf16 %v859_v0, %v859_v0 }
 0x634   :  { %v497_v12 = vunpack.c.l.b16 %v493_v2 }
 0x635   :  { %v498_v13 = vunpack.c.l.b16 %v494_v4 }
 0x636   :  { %v499_v14 = vrot.slane %v497_v12, 6 }
 0x637   :  { %v500_v15 = vrot.slane %v498_v13, 5 }
 0x639   :  { %v501_v17 = vsel %vm94_vm1, %v500_v15, %v499_v14 }
 0x63a   :  { %v502_v18 = vpack.c.b16 %v501_v17, %v501_v17 }
 0x63c   :  { %813 = vmatmul.mubr.bf16.vlgmr.msra.gmra.mrb[12].mxu0 %v502_v18 }
 0x70f   :  { %v538_v20 = vpop.f32.mrb[12].mxu0 }
 0x710   :  { %v545_v21 = vrot.slane %v538_v20, 1  ;;  %v546_v22 = vrot.slane %v538_v20, 2  ;;  %v814_v23 = vpop.f32.mrb[13].mxu0 }
 0x711   :  { %v541_v24 = vpop.f32.mrb[14].mxu0 }
 0x712   :  { %v549_v25 = vadd.f32 %v545_v21, %v1035_v19  ;;  %v550_v26 = vadd.f32 %v546_v22, %v1032_v16  ;;  %v815_v27 = vpop.f32.mrb[15].mxu0  ;;  %v612_v16 = vld [vmem:[%s1170_s5] ss:$0 sm:$0xff] }
 0x714   :  { %860 = vtanh.f32 %v549_v25 }
 0x715   :  { %862 = vtanh.f32 %v550_v26 }
 0x71e   :  { %v861_v29 = vpop.eup %860 }
 0x71f   :  { %v863_v30 = vpop.eup %862  ;;  %v560_v31 = vmul.f32 %v861_v29, %v611_v28 }
 0x720   :  { %v561_v32 = vmul.f32 %v863_v30, %v611_v28 }
 0x721   :  { %v568_v33 = vsel %vm567_vm2, %v560_v31, 0.0 }
 0x722   :  { %569 = vadd.xlane.f32.xlu1 %v568_v33  ;;  %v564_v34 = vrot.slane %v561_v32, 7 }
 0x724   :  { %v572_v35 = vsel %vm571_vm3, %v564_v34, 0.0 }
 0x726   :  { %573 = vadd.xlane.f32.xlu1 %v572_v35 }
 0x7af   :  { %v570_v19 = vpop.xlane.xlu1 %569 }
 0x7b0   :  { %v582_v36 = vadd.f32 %v612_v16, %v570_v19 }
 0x7b2   :  { %584 = vst [vmem:[#allocation5 - $0x7] sm:$0x80] %v582_v36 }
 0x7b3   :  { %v574_v37 = vpop.xlane.xlu1 %573 }
 0x7b4   :  { %v583_v38 = vadd.f32 %v612_v16, %v574_v37 }
 0x7b6   :  { %585 = vst [vmem:[#allocation5 + $0x1] sm:$0x1] %v583_v38 }
 0x7b7   :  { %897 = shalt.err (!%p894_p12)
}
 0x7b8   :  { %s898_s5 = scalar_lea.hbm %s1171_s6, 32 }
 0x7b9   :  { %p899_p13 = scmp.ne.s32.totalorder %s1171_s6, %s898_s5  ;;  %p902_p0 = scmp.lt.u32.totalorder %s898_s5, %s1171_s6 }
 0x7bb   :  { %p904_p1 = pnand %p902_p0, %p899_p13 }
 0x7bd   :  { %907 = shalt.err (!%p904_p1)
}
 0x7be   :  { %595 = dma.vmem_to_hbm [thread:$0]  %s593_s20, 32, %s1171_s6, [#allocation4]  }
 0x7bf   :  { %910 = dma.done.wait [#allocation4], 32  }
 0x7c0   :  { %911 = vsyncadd [#allocation4], 4294967264 }
 0x7c1   :  { %599 = vsyncpa [#allocation3], 1 }
 0x7c2   :  { %600 = vsyncpa [#allocation4], 1 }

</bundles_post_ra>
